<compile_context>
chip_gen: v6e
topology: v6e:2x2x1
jax: 0.10.0
libtpu: 0.0.40
codegen_flags: <defaults>
</compile_context>

<pallas_src>
import functools

import jax
import jax.numpy as jnp
from jax.experimental import pallas as pl
from jax.experimental.pallas import tpu as pltpu


def _round_up(x, m):
    return (x + m - 1) // m * m


@functools.lru_cache(maxsize=1)
def _vmem_capacity_bytes():
    try:
        cap = int(pltpu.get_tpu_info().vmem_capacity_bytes)
        if cap > 0:
            return cap
    except Exception:
        pass
    return 64 << 20          # conservative fallback: v7x per-TC VMEM


def _layer_norm_epilogue(y, gamma, beta, d_in, d_pad, eps):
    # Padded feature columns of y are exactly zero (zero-padded weights / bias /
    # residual), so the row sum over d_pad equals the sum over the real d_in features;
    # only the variance needs the padded columns masked out.
    mean = jnp.sum(y, axis=-1, keepdims=True) * (1.0 / d_in)
    centered = y - mean
    if d_pad != d_in:
        col = jax.lax.broadcasted_iota(jnp.int32, y.shape, 1)
        centered = jnp.where(col < d_in, centered, 0.0)
    var = jnp.sum(centered * centered, axis=-1, keepdims=True) * (1.0 / d_in)
    y_hat = centered * jax.lax.rsqrt(var + eps)
    return y_hat * gamma + beta


def _ffn_kernel_resident(x_ref, w1_ref, b1_ref, w2_ref, b2_ref, gamma_ref, beta_ref,
                         o_ref, *, d_in, d_pad, matmul_dtype, eps=1e-6):
    # Full hidden dim resident in VMEM: one pass per row tile, no accumulator.
    x = x_ref[...]                                           # f32 (residual operand)
    h = jnp.dot(x.astype(matmul_dtype), w1_ref[...],
                preferred_element_type=jnp.float32)
    h = jnp.maximum(h + b1_ref[...], 0.0)
    y = jnp.dot(h.astype(matmul_dtype), w2_ref[...],
                preferred_element_type=jnp.float32)
    # TODO(synk): dropout (p=0.1) is identity in eval mode; training dropout omitted.
    y = y + b2_ref[...] + x
    o_ref[...] = _layer_norm_epilogue(y, gamma_ref[...], beta_ref[...],
                                      d_in, d_pad, eps).astype(o_ref.dtype)


def _ffn_kernel_split(x_ref, w1_ref, b1_ref, w2_ref, b2_ref, gamma_ref, beta_ref,
                      o_ref, x_mm_ref, acc_ref, *, d_in, d_pad, matmul_dtype, eps=1e-6):
    k = pl.program_id(1)

    @pl.when(k == 0)
    def _init():
        acc_ref[...] = jnp.zeros_like(acc_ref)
        # x block is k-invariant ((i, 0) index map): cast to the MXU dtype once.
        x_mm_ref[...] = x_ref[...].astype(matmul_dtype)

    h = jnp.dot(x_mm_ref[...], w1_ref[...], preferred_element_type=jnp.float32)
    h = jnp.maximum(h + b1_ref[...], 0.0)
    acc_ref[...] += jnp.dot(h.astype(matmul_dtype), w2_ref[...],
                            preferred_element_type=jnp.float32)

    @pl.when(k == pl.num_programs(1) - 1)
    def _epilogue():
        # TODO(synk): dropout (p=0.1) is identity in eval mode; training dropout omitted.
        y = acc_ref[...] + b2_ref[...] + x_ref[...]
        o_ref[...] = _layer_norm_epilogue(y, gamma_ref[...], beta_ref[...],
                                          d_in, d_pad, eps).astype(o_ref.dtype)


def _vmem_bytes(tm, tk, d_pad, dh_pad, mm_item, split):
    """Conservative VMEM estimate for a tiling (double-buffered BlockSpecs + temps)."""
    w = 2 * 2 * d_pad * tk * mm_item                 # w1 + w2 tiles, double-buffered
    io = 2 * 2 * tm * d_pad * 4                      # x in + out tiles, double-buffered f32
    small = 2 * 8 * (tk + 3 * d_pad) * 4             # b1 / b2 / gamma / beta (sublane-padded)
    tmp = tm * tk * (4 + mm_item)                    # h (f32) + its matmul-dtype copy
    tmp += 3 * tm * d_pad * 4                        # epilogue temporaries (y, centered, ...)
    if split:
        tmp += tm * d_pad * (4 + mm_item)            # f32 accumulator + x_mm scratch
    return w + io + small + tmp + (4 << 20)          # + compiler-internal headroom


def _choose_tm(n, requested):
    n8 = _round_up(max(n, 1), 8)
    tm = max(8, min(_round_up(requested, 8), n8))
    # Keep >= 2 row tiles when possible so the "parallel" axis can feed both v7x TCs.
    if n8 > 8 and n8 // tm < 2:
        tm = _round_up((n8 + 1) // 2, 8)
    return tm


@functools.partial(jax.jit, static_argnames=("tm", "matmul_dtype"))
def positionwise_feed_forward(x, params, *, tm=256, matmul_dtype=jnp.bfloat16):
    """x: (batch, seq, d_in) float32. params: dict with w1, b1, w2, b2, gamma, beta."""
    batch, seq, d_in = x.shape
    d_hid = params["w1"].shape[1]
    n = batch * seq

    d_pad = _round_up(d_in, 128)
    dh_pad = _round_up(d_hid, 128)
    mm_item = jnp.dtype(matmul_dtype).itemsize

    # ---- generation-aware VMEM budget (v5e/v6e: 128 MiB, v7x: 64 MiB per TC) ----
    vmem_cap = _vmem_capacity_bytes()
    vmem_usable = min(vmem_cap - (8 << 20), 100 << 20)

    # ---- tile selection: prefer full weight residency (nk == 1) ----
    tm_sel = _choose_tm(n, tm)
    tk_hid = dh_pad
    if _vmem_bytes(tm_sel, dh_pad, d_pad, dh_pad, mm_item, split=False) > vmem_usable:
        # Weight-streaming regime: raise tm (intensity ~ tm FLOPs/weight-byte) and
        # split the hidden dim with the largest tile that fits.
        tm_sel = _choose_tm(n, max(tm, 512))
        tk_hid = 128
        for cand in range(dh_pad, 0, -128):
            if dh_pad % cand == 0 and _vmem_bytes(
                    tm_sel, cand, d_pad, dh_pad, mm_item, split=True) <= vmem_usable:
                tk_hid = cand
                break
        while tm_sel > 8 and _vmem_bytes(
                tm_sel, tk_hid, d_pad, dh_pad, mm_item, split=True) > vmem_usable:
            tm_sel = max(8, _round_up(tm_sel // 2, 8))
    nk = dh_pad // tk_hid
    n_pad = _round_up(n, tm_sel)
    row_tiles = n_pad // tm_sel

    # ---- pad operands: lane-dense (128-multiple) feature dims + row remainder ----
    x2d = jnp.pad(x.reshape(n, d_in).astype(jnp.float32),
                  ((0, n_pad - n), (0, d_pad - d_in)))

    def pad2(a, r, c):
        return jnp.pad(a, ((0, r - a.shape[0]), (0, c - a.shape[1])))

    w1 = pad2(params["w1"], d_pad, dh_pad).astype(matmul_dtype)        # (d_pad, dh_pad)
    w2 = pad2(params["w2"], dh_pad, d_pad).astype(matmul_dtype)        # (dh_pad, d_pad)
    b1 = jnp.pad(params["b1"], (0, dh_pad - d_hid)).reshape(1, dh_pad).astype(jnp.float32)
    b2 = jnp.pad(params["b2"], (0, d_pad - d_in)).reshape(1, d_pad).astype(jnp.float32)
    gamma = jnp.pad(params["gamma"], (0, d_pad - d_in)).reshape(1, d_pad).astype(jnp.float32)
    beta = jnp.pad(params["beta"], (0, d_pad - d_in)).reshape(1, d_pad).astype(jnp.float32)

    # ---- advisory cost estimate for XLA's scheduler ----
    weight_passes = 1 if nk == 1 else row_tiles
    cost = pl.CostEstimate(
        flops=int(4 * n_pad * d_pad * dh_pad),
        transcendentals=int(n_pad),                              # one rsqrt per row
        bytes_accessed=int(2 * n_pad * d_pad * 4
                           + 2 * d_pad * dh_pad * mm_item * weight_passes),
    )

    need = _vmem_bytes(tm_sel, tk_hid, d_pad, dh_pad, mm_item, split=(nk > 1))
    vmem_limit = int(min(max(need, 32 << 20), vmem_cap - (4 << 20)))

    if nk == 1:
        kernel = functools.partial(_ffn_kernel_resident, d_in=d_in, d_pad=d_pad,
                                   matmul_dtype=matmul_dtype)
        grid_spec = pltpu.PrefetchScalarGridSpec(
            num_scalar_prefetch=0,
            grid=(row_tiles,),
            in_specs=[
                pl.BlockSpec((tm_sel, d_pad), lambda i: (i, 0)),       # x
                pl.BlockSpec((d_pad, dh_pad), lambda i: (0, 0)),       # w1 (resident)
                pl.BlockSpec((1, dh_pad), lambda i: (0, 0)),           # b1
                pl.BlockSpec((dh_pad, d_pad), lambda i: (0, 0)),       # w2 (resident)
                pl.BlockSpec((1, d_pad), lambda i: (0, 0)),            # b2
                pl.BlockSpec((1, d_pad), lambda i: (0, 0)),            # gamma
                pl.BlockSpec((1, d_pad), lambda i: (0, 0)),            # beta
            ],
            out_specs=pl.BlockSpec((tm_sel, d_pad), lambda i: (i, 0)),
        )
        dim_sem = ("parallel",)
    else:
        kernel = functools.partial(_ffn_kernel_split, d_in=d_in, d_pad=d_pad,
                                   matmul_dtype=matmul_dtype)
        grid_spec = pltpu.PrefetchScalarGridSpec(
            num_scalar_prefetch=0,
            grid=(row_tiles, nk),
            in_specs=[
                pl.BlockSpec((tm_sel, d_pad), lambda i, k: (i, 0)),    # x
                pl.BlockSpec((d_pad, tk_hid), lambda i, k: (0, k)),    # w1 tile
                pl.BlockSpec((1, tk_hid), lambda i, k: (0, k)),        # b1 tile
                pl.BlockSpec((tk_hid, d_pad), lambda i, k: (k, 0)),    # w2 tile
                pl.BlockSpec((1, d_pad), lambda i, k: (0, 0)),         # b2
                pl.BlockSpec((1, d_pad), lambda i, k: (0, 0)),         # gamma
                pl.BlockSpec((1, d_pad), lambda i, k: (0, 0)),         # beta
            ],
            out_specs=pl.BlockSpec((tm_sel, d_pad), lambda i, k: (i, 0)),
            scratch_shapes=[pltpu.VMEM((tm_sel, d_pad), matmul_dtype),  # x_mm
                            pltpu.VMEM((tm_sel, d_pad), jnp.float32)],  # accumulator
        )
        dim_sem = ("parallel", "arbitrary")

    out2d = pl.pallas_call(
        kernel,
        out_shape=jax.ShapeDtypeStruct((n_pad, d_pad), x.dtype),
        grid_spec=grid_spec,
        compiler_params=pltpu.CompilerParams(
            dimension_semantics=dim_sem,
            vmem_limit_bytes=vmem_limit,
        ),
        cost_estimate=cost,
    )(x2d, w1, b1, w2, b2, gamma, beta)

    return out2d[:n, :d_in].reshape(batch, seq, d_in)


def init_params(key, d_in, d_hid):
    """Deterministic init mimicking nn.Linear default (uniform +-1/sqrt(fan_in))."""
    k1, k2, k3, k4 = jax.random.split(key, 4)
    lim1 = 1.0 / (d_in ** 0.5)
    lim2 = 1.0 / (d_hid ** 0.5)
    return {
        "w1": jax.random.uniform(k1, (d_in, d_hid), jnp.float32, -lim1, lim1),
        "b1": jax.random.uniform(k2, (d_hid,), jnp.float32, -lim1, lim1),
        "w2": jax.random.uniform(k3, (d_hid, d_in), jnp.float32, -lim2, lim2),
        "b2": jax.random.uniform(k4, (d_in,), jnp.float32, -lim2, lim2),
        "gamma": jnp.ones((d_in,), jnp.float32),
        "beta": jnp.zeros((d_in,), jnp.float32),
    }


def reference(x, params):
    """Pure-JAX reference of the PyTorch forward (eval mode)."""
    w1, b1, w2, b2 = params["w1"], params["b1"], params["w2"], params["b2"]
    y = jnp.maximum(x @ w1 + b1, 0.0) @ w2 + b2
    y = y + x
    mean = jnp.mean(y, axis=-1, keepdims=True)
    var = jnp.mean((y - mean) ** 2, axis=-1, keepdims=True)
    return (y - mean) / jnp.sqrt(var + 1e-6) * params["gamma"] + params["beta"]


if __name__ == "__main__":
    batch, seq, d_in, d_hid = 2, 8, 32, 64
    key = jax.random.PRNGKey(0)
    kx, kp = jax.random.split(key)
    x = jax.random.normal(kx, (batch, seq, d_in), jnp.float32)
    params = init_params(kp, d_in, d_hid)

    ref = reference(x, params)

    # Parity path: f32 MXU operands (tolerance is the contract; Mosaic's default f32
    # multipass precision is used).
    out_f32 = jax.block_until_ready(
        positionwise_feed_forward(x, params, matmul_dtype=jnp.float32))
    assert out_f32.shape == (batch, seq, d_in)
    assert jnp.allclose(out_f32, ref, atol=1e-4, rtol=1e-4), "f32 mismatch vs reference"

    # Fast path (default): bf16 MXU operands, f32 accumulation + f32 epilogue.
    out_bf16 = jax.block_until_ready(positionwise_feed_forward(x, params))
    assert out_bf16.shape == (batch, seq, d_in)
    assert jnp.allclose(out_bf16, ref, atol=5e-2, rtol=5e-2), "bf16 mismatch vs reference"

    print("KERNEL_OK")
</pallas_src>

<mosaic_0001>
module attributes {stable_mosaic.version = 11 : i64} {
  func.func @_ffn_kernel_resident(%arg0: i32, %arg1: memref<8x128xf32, #tpu.memory_space<vmem>>, %arg2: memref<128x128xf32, #tpu.memory_space<vmem>>, %arg3: memref<1x128xf32, #tpu.memory_space<vmem>>, %arg4: memref<128x128xf32, #tpu.memory_space<vmem>>, %arg5: memref<1x128xf32, #tpu.memory_space<vmem>>, %arg6: memref<1x128xf32, #tpu.memory_space<vmem>>, %arg7: memref<1x128xf32, #tpu.memory_space<vmem>>, %arg8: memref<8x128xf32, #tpu.memory_space<vmem>>) attributes {dimension_semantics = [#tpu.dimension_semantics<parallel>], iteration_bounds = array<i64: 2>, scalar_prefetch = 0 : i64, scratch_operands = 0 : i64, tpu.core_type = #tpu.core_type<tc>, window_params = [{transform_indices = @transform_0, window_bounds = array<i64: 8, 128>}, {pipeline_mode = #tpu.pipeline_mode<synchronous>, transform_indices = @transform_1, window_bounds = array<i64: 128, 128>}, {pipeline_mode = #tpu.pipeline_mode<synchronous>, transform_indices = @transform_2, window_bounds = array<i64: 1, 128>}, {pipeline_mode = #tpu.pipeline_mode<synchronous>, transform_indices = @transform_3, window_bounds = array<i64: 128, 128>}, {pipeline_mode = #tpu.pipeline_mode<synchronous>, transform_indices = @transform_4, window_bounds = array<i64: 1, 128>}, {pipeline_mode = #tpu.pipeline_mode<synchronous>, transform_indices = @transform_5, window_bounds = array<i64: 1, 128>}, {pipeline_mode = #tpu.pipeline_mode<synchronous>, transform_indices = @transform_6, window_bounds = array<i64: 1, 128>}, {transform_indices = @transform_7, window_bounds = array<i64: 8, 128>}]} {
    %c0 = arith.constant 0 : index
    %c0_0 = arith.constant 0 : index
    %0 = vector.load %arg1[%c0, %c0_0] : memref<8x128xf32, #tpu.memory_space<vmem>>, vector<8x128xf32>
    %c0_1 = arith.constant 0 : index
    %c0_2 = arith.constant 0 : index
    %1 = vector.load %arg2[%c0_1, %c0_2] : memref<128x128xf32, #tpu.memory_space<vmem>>, vector<128x128xf32>
    %cst = arith.constant dense<0.000000e+00> : vector<8x128xf32>
    %2 = tpu.matmul %0, %1, %cst {dimension_numbers = #tpu.dot_dimension_numbers<[1], [0], [0], [1], [0, 0, 1, 1], [], []>} : vector<8x128xf32>, vector<128x128xf32>, vector<8x128xf32> -> vector<8x128xf32>
    %c0_3 = arith.constant 0 : index
    %c0_4 = arith.constant 0 : index
    %3 = vector.load %arg3[%c0_3, %c0_4] : memref<1x128xf32, #tpu.memory_space<vmem>>, vector<1x128xf32>
    %4 = vector.broadcast %3 : vector<1x128xf32> to vector<8x128xf32>
    %5 = arith.addf %2, %4 : vector<8x128xf32>
    %cst_5 = arith.constant 0.000000e+00 : f32
    %6 = vector.broadcast %cst_5 : f32 to vector<8x128xf32>
    %7 = arith.maximumf %5, %6 : vector<8x128xf32>
    %c0_6 = arith.constant 0 : index
    %c0_7 = arith.constant 0 : index
    %8 = vector.load %arg4[%c0_6, %c0_7] : memref<128x128xf32, #tpu.memory_space<vmem>>, vector<128x128xf32>
    %cst_8 = arith.constant dense<0.000000e+00> : vector<8x128xf32>
    %9 = tpu.matmul %7, %8, %cst_8 {dimension_numbers = #tpu.dot_dimension_numbers<[1], [0], [0], [1], [0, 0, 1, 1], [], []>} : vector<8x128xf32>, vector<128x128xf32>, vector<8x128xf32> -> vector<8x128xf32>
    %c0_9 = arith.constant 0 : index
    %c0_10 = arith.constant 0 : index
    %10 = vector.load %arg5[%c0_9, %c0_10] : memref<1x128xf32, #tpu.memory_space<vmem>>, vector<1x128xf32>
    %11 = vector.broadcast %10 : vector<1x128xf32> to vector<8x128xf32>
    %12 = arith.addf %9, %11 : vector<8x128xf32>
    %13 = arith.addf %12, %0 : vector<8x128xf32>
    %c0_11 = arith.constant 0 : index
    %c0_12 = arith.constant 0 : index
    %14 = vector.load %arg6[%c0_11, %c0_12] : memref<1x128xf32, #tpu.memory_space<vmem>>, vector<1x128xf32>
    %c0_13 = arith.constant 0 : index
    %c0_14 = arith.constant 0 : index
    %15 = vector.load %arg7[%c0_13, %c0_14] : memref<1x128xf32, #tpu.memory_space<vmem>>, vector<1x128xf32>
    %cst_15 = arith.constant dense<0.000000e+00> : vector<8xf32>
    %16 = vector.multi_reduction <add>, %13, %cst_15 [1] : vector<8x128xf32> to vector<8xf32>
    %17 = vector.shape_cast %16 : vector<8xf32> to vector<8x1xf32>
    %cst_16 = arith.constant 3.125000e-02 : f32
    %18 = vector.broadcast %cst_16 : f32 to vector<8x1xf32>
    %19 = arith.mulf %17, %18 : vector<8x1xf32>
    %20 = vector.broadcast %19 : vector<8x1xf32> to vector<8x128xf32>
    %21 = arith.subf %13, %20 : vector<8x128xf32>
    %22 = tpu.iota {dimensions = array<i32: 1>} : vector<8x128xi32>
    %c32_i32 = arith.constant 32 : i32
    %23 = vector.broadcast %c32_i32 : i32 to vector<8x128xi32>
    %24 = arith.cmpi slt, %22, %23 : vector<8x128xi32>
    %cst_17 = arith.constant 0.000000e+00 : f32
    %25 = vector.broadcast %cst_17 : f32 to vector<8x128xf32>
    %26 = arith.select %24, %21, %25 : vector<8x128xi1>, vector<8x128xf32>
    %27 = arith.mulf %26, %26 : vector<8x128xf32>
    %cst_18 = arith.constant dense<0.000000e+00> : vector<8xf32>
    %28 = vector.multi_reduction <add>, %27, %cst_18 [1] : vector<8x128xf32> to vector<8xf32>
    %29 = vector.shape_cast %28 : vector<8xf32> to vector<8x1xf32>
    %cst_19 = arith.constant 3.125000e-02 : f32
    %30 = vector.broadcast %cst_19 : f32 to vector<8x1xf32>
    %31 = arith.mulf %29, %30 : vector<8x1xf32>
    %cst_20 = arith.constant 9.99999997E-7 : f32
    %32 = vector.broadcast %cst_20 : f32 to vector<8x1xf32>
    %33 = arith.addf %31, %32 : vector<8x1xf32>
    %34 = math.rsqrt %33 : vector<8x1xf32>
    %35 = vector.broadcast %34 : vector<8x1xf32> to vector<8x128xf32>
    %36 = arith.mulf %26, %35 : vector<8x128xf32>
    %37 = vector.broadcast %14 : vector<1x128xf32> to vector<8x128xf32>
    %38 = arith.mulf %36, %37 : vector<8x128xf32>
    %39 = vector.broadcast %15 : vector<1x128xf32> to vector<8x128xf32>
    %40 = arith.addf %38, %39 : vector<8x128xf32>
    %c0_21 = arith.constant 0 : index
    %c0_22 = arith.constant 0 : index
    %41 = vector.load %arg8[%c0_21, %c0_22] : memref<8x128xf32, #tpu.memory_space<vmem>>, vector<8x128xf32>
    tpu.vector_store %arg8[%c0_21, %c0_22], %40 {strides = array<i32>} : memref<8x128xf32, #tpu.memory_space<vmem>>, vector<8x128xf32>,
    return
  }
  func.func @transform_0(%arg0: i32) -> (i32, i32) {
    %c0_i32 = arith.constant 0 : i32
    %c0_i32_0 = arith.constant 0 : i32
    return %arg0, %c0_i32 : i32, i32
  }
  func.func @transform_1(%arg0: i32) -> (i32, i32) {
    %c0_i32 = arith.constant 0 : i32
    %c0_i32_0 = arith.constant 0 : i32
    %c0_i32_1 = arith.constant 0 : i32
    return %c0_i32, %c0_i32_0 : i32, i32
  }
  func.func @transform_2(%arg0: i32) -> (i32, i32) {
    %c0_i32 = arith.constant 0 : i32
    %c0_i32_0 = arith.constant 0 : i32
    %c0_i32_1 = arith.constant 0 : i32
    return %c0_i32, %c0_i32_0 : i32, i32
  }
  func.func @transform_3(%arg0: i32) -> (i32, i32) {
    %c0_i32 = arith.constant 0 : i32
    %c0_i32_0 = arith.constant 0 : i32
    %c0_i32_1 = arith.constant 0 : i32
    return %c0_i32, %c0_i32_0 : i32, i32
  }
  func.func @transform_4(%arg0: i32) -> (i32, i32) {
    %c0_i32 = arith.constant 0 : i32
    %c0_i32_0 = arith.constant 0 : i32
    %c0_i32_1 = arith.constant 0 : i32
    return %c0_i32, %c0_i32_0 : i32, i32
  }
  func.func @transform_5(%arg0: i32) -> (i32, i32) {
    %c0_i32 = arith.constant 0 : i32
    %c0_i32_0 = arith.constant 0 : i32
    %c0_i32_1 = arith.constant 0 : i32
    return %c0_i32, %c0_i32_0 : i32, i32
  }
  func.func @transform_6(%arg0: i32) -> (i32, i32) {
    %c0_i32 = arith.constant 0 : i32
    %c0_i32_0 = arith.constant 0 : i32
    %c0_i32_1 = arith.constant 0 : i32
    return %c0_i32, %c0_i32_0 : i32, i32
  }
  func.func @transform_7(%arg0: i32) -> (i32, i32) {
    %c0_i32 = arith.constant 0 : i32
    %c0_i32_0 = arith.constant 0 : i32
    return %arg0, %c0_i32 : i32, i32
  }
}

</mosaic_0001>

<bundles_post_ra>
// kernel: positionwise_feed_forward.1
= control target key start
LH: loop header
LB: loop body
LE: loop exit
PB: predicated region body
PF: predicated region fallthrough
CT: control target
= control target key end

     0   :  { %s727_s24 = smov 0   ;;  %s897_s0 = inlined_call_operand.vmem [shape: f32[16,128], index: 0, kind: input, shape index: {}]   ;;  %s898_s1 = inlined_call_operand.vmem [shape: f32[128,128], index: 1, kind: input, shape index: {}]   ;;  %s899_s2 = inlined_call_operand.vmem [shape: f32[1,128], index: 2, kind: input, shape index: {}]   ;;  %s900_s3 = inlined_call_operand.vmem [shape: f32[128,128], index: 3, kind: input, shape index: {}]   ;;  %s901_s4 = inlined_call_operand.vmem [shape: f32[1,128], index: 4, kind: input, shape index: {}]   ;;  %s902_s5 = inlined_call_operand.vmem [shape: f32[1,128], index: 5, kind: input, shape index: {}]   ;;  %s903_s6 = inlined_call_operand.vmem [shape: f32[1,128], index: 6, kind: input, shape index: {}]   ;;  %s904_s7 = inlined_call_operand.vmem [shape: f32[16,128], index: 7, kind: output, shape index: {}]  }
   0x1 LB: > { %s548_s25 = sadd.s32 4294967295, %s683_s24   ;;  %p552_p0 = scmp.ge.s32.totalorder %s683_s24, 1  ;;  %s683_s24 = sphi %s727_s24, %s17_s24  }
   0x2   : > { %p236_p1 = scmp.lt.s32.totalorder %s683_s24, 3 }
   0x4   : > { %p237_p2 = pnand %p552_p0, %p236_p1 }
   0x5   : > { %p266_p3 = scmp.lt.s32.totalorder (!%p237_p2), %s548_s25, 1 }
   0x6   : > { %240 = sbr.rel (%p237_p2) target bundleno = 746 (0x2ea), region = 48 }
   0xb   : > { %v290_v0 = vld [vmem:[%s898_s1 + $0x78] sm:$0xff]  ;;  %v685_v1 = vmov 0.0   ;;  %v289_v2 = vld [vmem:[%s898_s1 + $0x70] sm:$0xff]  ;;  %vm686_vm0 = vmmov 0   ;;  %v288_v3 = vld [vmem:[%s898_s1 + $0x68] sm:$0xff]  ;;  %s906_s25 = smov (!%p266_p3, %s548_s25), 1  ;;  %v469_v44 = vlaneseq }
   0xc   : > { %595 = vmatprep.subr.mxu0 %v685_v1  ;;  %627 = vmatprep.mubr.msk.f32.mxu0 %vm686_vm0, %v685_v1  ;;  %v287_v4 = vld [vmem:[%s898_s1 + $0x60] sm:$0xff]  ;;  %v384_v5 = vld [vmem:[%s900_s3 + $0x78] sm:$0xff]  ;;  %v383_v6 = vld [vmem:[%s900_s3 + $0x70] sm:$0xff]  ;;  %s553_s9 = sshll.u32 %s906_s25, 3 }
   0xd   : > { %596 = vmatpush3.msra.mxu0 %v290_v0  ;;  %630 = vmatprep.subr.mxu1 %v685_v1  ;;  %v286_v7 = vld [vmem:[%s898_s1 + $0x58] sm:$0xff]  ;;  %v382_v8 = vld [vmem:[%s900_s3 + $0x68] sm:$0xff]  ;;  %v285_v9 = vld [vmem:[%s898_s1 + $0x50] sm:$0xff]  ;;  %s269_s18 = scalar_lea.vmem %s897_s0, %s553_s9  ;;  %v470_v45 = vand.u32 127, %v469_v44  ;;  %s273_s19 = scalar_lea.vmem %s904_s7, %s553_s9 }
   0xe   : > { %597 = vmatprep.subr.mxu0 %v685_v1  ;;  %662 = vmatprep.mubr.msk.f32.mxu1 %vm686_vm0, %v685_v1  ;;  %v381_v10 = vld [vmem:[%s900_s3 + $0x60] sm:$0xff]  ;;  %v284_v11 = vld [vmem:[%s898_s1 + $0x48] sm:$0xff]  ;;  %v380_v12 = vld [vmem:[%s900_s3 + $0x58] sm:$0xff] }
   0xf   : > { %598 = vmatpush3.msra.mxu0 %v289_v2  ;;  %631 = vmatpush3.msra.mxu1 %v384_v5  ;;  %v283_v13 = vld [vmem:[%s898_s1 + $0x40] sm:$0xff]  ;;  %v379_v14 = vld [vmem:[%s900_s3 + $0x50] sm:$0xff]  ;;  %v282_v15 = vld [vmem:[%s898_s1 + $0x38] sm:$0xff]  ;;  %vm471_vm1 = vcmp.lt.s32.totalorder %v470_v45, 32 }
  0x10   : > { %599 = vmatprep.subr.mxu0 %v685_v1  ;;  %632 = vmatprep.subr.mxu1 %v685_v1  ;;  %v378_v16 = vld [vmem:[%s900_s3 + $0x48] sm:$0xff]  ;;  %v281_v17 = vld [vmem:[%s898_s1 + $0x30] sm:$0xff]  ;;  %v377_v18 = vld [vmem:[%s900_s3 + $0x40] sm:$0xff] }
  0x11   : > { %600 = vmatpush3.msra.mxu0 %v288_v3  ;;  %633 = vmatpush3.msra.mxu1 %v383_v6  ;;  %v280_v19 = vld [vmem:[%s898_s1 + $0x28] sm:$0xff]  ;;  %v376_v20 = vld [vmem:[%s900_s3 + $0x38] sm:$0xff]  ;;  %v279_v21 = vld [vmem:[%s898_s1 + $0x20] sm:$0xff] }
  0x12   : > { %601 = vmatprep.subr.mxu0 %v685_v1  ;;  %634 = vmatprep.subr.mxu1 %v685_v1  ;;  %v375_v22 = vld [vmem:[%s900_s3 + $0x30] sm:$0xff]  ;;  %v278_v23 = vld [vmem:[%s898_s1 + $0x18] sm:$0xff]  ;;  %v374_v24 = vld [vmem:[%s900_s3 + $0x28] sm:$0xff] }
  0x13   : > { %602 = vmatpush3.msra.mxu0 %v287_v4  ;;  %635 = vmatpush3.msra.mxu1 %v382_v8  ;;  %v277_v25 = vld [vmem:[%s898_s1 + $0x10] sm:$0xff]  ;;  %v373_v26 = vld [vmem:[%s900_s3 + $0x20] sm:$0xff]  ;;  %v276_v27 = vld [vmem:[%s898_s1 + $0x8] sm:$0xff] }
  0x14   : > { %603 = vmatprep.subr.mxu0 %v685_v1  ;;  %636 = vmatprep.subr.mxu1 %v685_v1  ;;  %v372_v28 = vld [vmem:[%s900_s3 + $0x18] sm:$0xff]  ;;  %v275_v29 = vld [vmem:[%s898_s1] sm:$0xff]  ;;  %v371_v31 = vld [vmem:[%s900_s3 + $0x10] sm:$0xff] }
  0x15   : > { %604 = vmatpush3.msra.mxu0 %v286_v7  ;;  %637 = vmatpush3.msra.mxu1 %v381_v10  ;;  %v274_v30 = vld [vmem:[%s269_s18] sm:$0xff]  ;;  %v370_v32 = vld [vmem:[%s900_s3 + $0x8] sm:$0xff] }
  0x16   : > { %605 = vmatprep.subr.mxu0 %v685_v1  ;;  %638 = vmatprep.subr.mxu1 %v685_v1  ;;  %v369_v33 = vld [vmem:[%s900_s3] sm:$0xff] }
  0x17   : > { %606 = vmatpush3.msra.mxu0 %v285_v9  ;;  %639 = vmatpush3.msra.mxu1 %v380_v12  ;;  %v555_v34 = vld [vmem:[%s899_s2] ss:$0 sm:$0xff] }
  0x18   : > { %607 = vmatprep.subr.mxu0 %v685_v1  ;;  %640 = vmatprep.subr.mxu1 %v685_v1  ;;  %v556_v39 = vld [vmem:[%s901_s4] ss:$0 sm:$0xff] }
  0x19   : > { %608 = vmatpush3.msra.mxu0 %v284_v11  ;;  %641 = vmatpush3.msra.mxu1 %v379_v14  ;;  %v557_v55 = vld [vmem:[%s902_s5] ss:$0 sm:$0xff] }
  0x1a   : > { %609 = vmatprep.subr.mxu0 %v685_v1  ;;  %642 = vmatprep.subr.mxu1 %v685_v1  ;;  %v558_v57 = vld [vmem:[%s903_s6] ss:$0 sm:$0xff] }
  0x1b   : > { %610 = vmatpush3.msra.mxu0 %v283_v13  ;;  %643 = vmatpush3.msra.mxu1 %v378_v16 }
  0x1c   : > { %611 = vmatprep.subr.mxu0 %v685_v1  ;;  %644 = vmatprep.subr.mxu1 %v685_v1 }
  0x1d   : > { %612 = vmatpush3.msra.mxu0 %v282_v15  ;;  %645 = vmatpush3.msra.mxu1 %v377_v18 }
  0x1e   : > { %613 = vmatprep.subr.mxu0 %v685_v1  ;;  %646 = vmatprep.subr.mxu1 %v685_v1 }
  0x1f   : > { %614 = vmatpush3.msra.mxu0 %v281_v17  ;;  %647 = vmatpush3.msra.mxu1 %v376_v20 }
  0x20   : > { %615 = vmatprep.subr.mxu0 %v685_v1  ;;  %648 = vmatprep.subr.mxu1 %v685_v1 }
  0x21   : > { %616 = vmatpush3.msra.mxu0 %v280_v19  ;;  %649 = vmatpush3.msra.mxu1 %v375_v22 }
  0x22   : > { %617 = vmatprep.subr.mxu0 %v685_v1  ;;  %650 = vmatprep.subr.mxu1 %v685_v1 }
  0x23   : > { %618 = vmatpush3.msra.mxu0 %v279_v21  ;;  %651 = vmatpush3.msra.mxu1 %v374_v24 }
  0x24   : > { %619 = vmatprep.subr.mxu0 %v685_v1  ;;  %652 = vmatprep.subr.mxu1 %v685_v1 }
  0x25   : > { %620 = vmatpush3.msra.mxu0 %v278_v23  ;;  %653 = vmatpush3.msra.mxu1 %v373_v26 }
  0x26   : > { %621 = vmatprep.subr.mxu0 %v685_v1  ;;  %654 = vmatprep.subr.mxu1 %v685_v1 }
  0x27   : > { %622 = vmatpush3.msra.mxu0 %v277_v25  ;;  %655 = vmatpush3.msra.mxu1 %v372_v28 }
  0x28   : > { %623 = vmatprep.subr.mxu0 %v685_v1  ;;  %656 = vmatprep.subr.mxu1 %v685_v1 }
  0x29   : > { %624 = vmatpush3.msra.mxu0 %v276_v27  ;;  %657 = vmatpush3.msra.mxu1 %v371_v31 }
  0x2a   : > { %625 = vmatprep.subr.mxu0 %v685_v1  ;;  %658 = vmatprep.subr.mxu1 %v685_v1 }
  0x2b   : > { %626 = vmatpush3.msra.mxu0 %v275_v29  ;;  %659 = vmatpush3.msra.mxu1 %v370_v32 }
  0x2c   : > { %628 = vmatmul.mubr.f32.vlgmr.msra.gmra.mxu0 %v274_v30  ;;  %660 = vmatprep.subr.mxu1 %v685_v1 }
  0x2d   : > { %661 = vmatpush3.msra.mxu1 %v369_v33 }
  0xec   : > { %v364_v35 = vpop.f32.mrf.mxu0 }
  0xed   : > { %v365_v36 = vadd.f32 %v555_v34, %v364_v35 }
  0xee   : > { %v629_v37 = vpop.f32.mrf.mxu0 }
  0xef   : > { %v368_v38 = vmax.f32 %v365_v36, 0.0 }
  0xf1   : > { %663 = vmatmul.mubr.f32.vlgmr.msra.gmra.mxu1 %v368_v38 }
 0x1b1   : > { %v458_v40 = vpop.f32.mrf.mxu1 }
 0x1b2   : > { %v459_v41 = vadd.f32 %v556_v39, %v458_v40 }
 0x1b3   : > { %v664_v42 = vpop.f32.mrf.mxu1 }
 0x1b4   : > { %v462_v43 = vadd.f32 %v459_v41, %v274_v30 }
 0x1b6   : > { %465 = vadd.xlane.f32.xlu0 %v462_v43 }
 0x23f   : > { %v466_v46 = vpop.xlane.xlu0 %465 }
 0x240   : > { %v467_v47 = vmul.f32 0.03125, %v466_v46 }
 0x242   : > { %v468_v48 = vsub.f32 %v462_v43, %v467_v47 }
 0x244   : > { %v472_v49 = vsel %vm471_vm1, %v468_v48, 0.0 }
 0x245   : > { %v473_v50 = vmul.f32 %v472_v49, %v472_v49 }
 0x247   : > { %474 = vadd.xlane.f32.xlu0 %v473_v50 }
 0x2d0   : > { %v475_v51 = vpop.xlane.xlu0 %474 }
 0x2d1   : > { %v476_v52 = vmul.f32 0.03125, %v475_v51 }
 0x2d3   : > { %v477_v53 = vadd.f32 1e-06, %v476_v52 }
 0x2d5   : > { %675 = vrsqrt.f32 %v477_v53 }
 0x2e2   : > { %v676_v54 = vpop.eup %675 }
 0x2e3   : > { %v479_v56 = vmul.f32 %v676_v54, %v472_v49 }
 0x2e5   : > { %v486_v58 = vmul.f32 %v557_v55, %v479_v56 }
 0x2e7   : > { %v493_v59 = vadd.f32 %v558_v57, %v486_v58 }
 0x2e9   : > { %494 = vst [vmem:[%s273_s19] sm:$0xff] %v493_v59 }
 0x2ea PF: > { %s17_s24 = sadd.s32 1, %s683_s24  }
 0x2eb   : > { %p14_p4 = scmp.ge.s32.totalorder %s17_s24, 4  }
 0x2ed   :  { %16 = sbr.rel (!%p14_p4) target bundleno = 1 (0x1), region = 78 }

</bundles_post_ra>
